<compile_context>
chip_gen: v5e
topology: v5e:2x2
jax: 0.10.0
libtpu: 0.0.40
codegen_flags: <defaults>
</compile_context>

<pallas_src>
import functools

import jax
import jax.numpy as jnp
from jax.experimental import pallas as pl
from jax.experimental.pallas import tpu as pltpu


def _dice_partial_kernel(pred_ref, target_ref, inter_ref, psum_ref, tsum_ref,
                         *, tiles_per_split, tile_n, spatial_len, mask_lanes):
    """Grid = (n_split, row_tiles, tiles_per_split).

    Each step reduces a (TM, TN) tile of the flattened (B*C, H*W) arrays into
    per-row partial sums that live directly in the output blocks (resident
    across the spatial axis because their index_map ignores it).
    """
    j = pl.program_id(2)

    @pl.when(j == 0)
    def _():
        inter_ref[...] = jnp.zeros_like(inter_ref)
        psum_ref[...] = jnp.zeros_like(psum_ref)
        tsum_ref[...] = jnp.zeros_like(tsum_ref)

    # Native-dtype tiles, cast in registers (keeps HBM bytes minimal).
    p = pred_ref[...].astype(jnp.float32)     # (TM, TN)
    t = target_ref[...].astype(jnp.float32)   # (TM, TN)

    if mask_lanes:
        # Ragged spatial remainder (and any duplicated overflow tile from the
        # split axis) is zeroed here instead of padding the inputs in HBM.
        s = pl.program_id(0)
        start = (s * tiles_per_split + j) * tile_n
        lane = jax.lax.broadcasted_iota(jnp.int32, p.shape, 1)
        valid = (start + lane) < spatial_len
        p = jnp.where(valid, p, 0.0)
        t = jnp.where(valid, t, 0.0)

    # Elementwise product on the VPU, cross-lane reductions on the XLU.
    inter_ref[...] += jnp.sum(p * t, axis=1, keepdims=True)   # (TM, 1)
    psum_ref[...] += jnp.sum(p, axis=1, keepdims=True)
    tsum_ref[...] += jnp.sum(t, axis=1, keepdims=True)


def _dice_loss_ref(pred, target, smooth=1.0):
    pred = pred.astype(jnp.float32)
    target = target.astype(jnp.float32)
    inter = jnp.sum(pred * target, axis=(2, 3))
    union = jnp.sum(pred, axis=(2, 3)) + jnp.sum(target, axis=(2, 3))
    dice = (2.0 * inter + smooth) / (union + smooth)
    return jnp.mean(1.0 - dice)


def dice_loss(pred, target, smooth=1.0, *, row_tile=128, lane_tile=4096,
              num_splits=None, force_pallas=False):
    """Dice loss matching the PyTorch DiceLoss.forward semantics."""
    assert pred.ndim == 4 and pred.shape == target.shape
    assert row_tile % 8 == 0 and lane_tile % 128 == 0
    B, C, H, W = pred.shape
    N, L = B * C, H * W

    # Fixed pallas_call + pipeline-ramp overhead dominates for tiny inputs.
    if not force_pallas and N * L < (64 * 1024):
        return _dice_loss_ref(pred, target, smooth)

    pred2 = pred.reshape(N, L)     # native dtype, no pad, no f32 copy in HBM
    tgt2 = target.reshape(N, L)

    # Block shape: multiples of (8, 128) or equal to the full array dims.
    TM = N if N <= row_tile else row_tile
    TN = L if L <= lane_tile else lane_tile
    n_row_tiles = pl.cdiv(N, TM)
    n_lane_tiles = pl.cdiv(L, TN)

    if num_splits is None:
        # Split the spatial reduction across TensorCores (v7x megacore) only
        # when the row axis alone cannot feed a second core and there is
        # enough spatial work to amortize the extra epilogue/combine.
        num_splits = 2 if (n_row_tiles == 1 and n_lane_tiles >= 4) else 1
    num_splits = max(1, min(int(num_splits), n_lane_tiles))
    tiles_per_split = pl.cdiv(n_lane_tiles, num_splits)

    # Static flags: clamp keeps the DMA in-bounds when the split over-covers
    # the tile range; mask_lanes zeroes padded / duplicated lanes in-kernel.
    clamp = num_splits * tiles_per_split > n_lane_tiles
    mask_lanes = num_splits * tiles_per_split * TN > L

    def in_index_map(s, i, j):
        tile = s * tiles_per_split + j
        if clamp:   # overflow tiles re-read the last tile; fully masked away
            tile = jnp.minimum(tile, n_lane_tiles - 1)
        return (i, tile)

    out_spec = pl.BlockSpec((None, TM, 1), lambda s, i, j: (s, i, 0))
    out_sds = jax.ShapeDtypeStruct((num_splits, N, 1), jnp.float32)

    inter, psum, tsum = pl.pallas_call(
        functools.partial(
            _dice_partial_kernel,
            tiles_per_split=tiles_per_split, tile_n=TN,
            spatial_len=L, mask_lanes=mask_lanes),
        out_shape=(out_sds, out_sds, out_sds),
        grid_spec=pltpu.PrefetchScalarGridSpec(
            num_scalar_prefetch=0,
            grid=(num_splits, n_row_tiles, tiles_per_split),
            in_specs=[
                pl.BlockSpec((TM, TN), in_index_map),
                pl.BlockSpec((TM, TN), in_index_map),
            ],
            out_specs=(out_spec, out_spec, out_spec),
        ),
        compiler_params=pltpu.CompilerParams(
            dimension_semantics=("parallel", "parallel", "arbitrary")),
    )(pred2, tgt2)

    # Tiny finalize in plain XLA: combine the per-split partials, dice, mean.
    inter = jnp.sum(inter[..., 0], axis=0)                      # (N,)
    union = jnp.sum(psum[..., 0] + tsum[..., 0], axis=0)        # (N,)
    dice = (2.0 * inter + float(smooth)) / (union + float(smooth))
    return jnp.mean(1.0 - dice)


if __name__ == "__main__":
    key = jax.random.PRNGKey(0)
    k1, k2, k3, k4 = jax.random.split(key, 4)

    # Case 1: nominal small shape (single tile, no masking, no split).
    B, C, H, W = 2, 4, 16, 16
    pred = jax.nn.sigmoid(jax.random.normal(k1, (B, C, H, W), dtype=jnp.float32))
    target = jax.random.bernoulli(k2, 0.5, (B, C, H, W)).astype(jnp.float32)
    loss = jax.block_until_ready(
        dice_loss(pred, target, smooth=1.0, force_pallas=True))
    ref = _dice_loss_ref(pred, target, smooth=1.0)
    assert loss.shape == () and bool(jnp.isfinite(loss))
    assert abs(float(loss) - float(ref)) < 1e-5, (float(loss), float(ref))

    # Case 2: ragged spatial size + forced 2-way spatial split (exercises the
    # in-kernel lane masking, index-map clamp, and the cross-split combine).
    B, C, H, W = 2, 3, 17, 19
    pred2 = jax.nn.sigmoid(jax.random.normal(k3, (B, C, H, W), dtype=jnp.float32))
    target2 = jax.random.bernoulli(k4, 0.5, (B, C, H, W)).astype(jnp.float32)
    loss2 = jax.block_until_ready(
        dice_loss(pred2, target2, smooth=1.0, force_pallas=True,
                  lane_tile=128, num_splits=2))
    ref2 = _dice_loss_ref(pred2, target2, smooth=1.0)
    assert abs(float(loss2) - float(ref2)) < 1e-5, (float(loss2), float(ref2))

    print("KERNEL_OK")
</pallas_src>

<mosaic_0001>
module attributes {stable_mosaic.version = 11 : i64} {
  func.func @_dice_partial_kernel(%arg0: i32, %arg1: i32, %arg2: i32, %arg3: memref<8x256xf32, #tpu.memory_space<vmem>>, %arg4: memref<8x256xf32, #tpu.memory_space<vmem>>, %arg5: memref<1x8x1xf32, #tpu.memory_space<vmem>>, %arg6: memref<1x8x1xf32, #tpu.memory_space<vmem>>, %arg7: memref<1x8x1xf32, #tpu.memory_space<vmem>>) attributes {dimension_semantics = [#tpu.dimension_semantics<parallel>, #tpu.dimension_semantics<parallel>, #tpu.dimension_semantics<arbitrary>], iteration_bounds = array<i64: 1, 1, 1>, scalar_prefetch = 0 : i64, scratch_operands = 0 : i64, tpu.core_type = #tpu.core_type<tc>, window_params = [{transform_indices = @transform_0, window_bounds = array<i64: 8, 256>}, {transform_indices = @transform_1, window_bounds = array<i64: 8, 256>}, {transform_indices = @transform_2, window_bounds = array<i64: 1, 8, 1>}, {transform_indices = @transform_3, window_bounds = array<i64: 1, 8, 1>}, {transform_indices = @transform_4, window_bounds = array<i64: 1, 8, 1>}]} {
    %c0_i32 = arith.constant 0 : i32
    %0 = arith.cmpi eq, %arg2, %c0_i32 : i32
    %1 = arith.extui %0 : i1 to i32
    %c0_i32_0 = arith.constant 0 : i32
    %2 = arith.cmpi ne, %1, %c0_i32_0 : i32
    scf.if %2 {
      %cst_24 = arith.constant 0.000000e+00 : f32
      %30 = vector.broadcast %cst_24 : f32 to vector<8x1xf32>
      %c0_25 = arith.constant 0 : index
      %c0_26 = arith.constant 0 : index
      %c0_27 = arith.constant 0 : index
      %31 = vector.load %arg5[%c0_25, %c0_26, %c0_27] : memref<1x8x1xf32, #tpu.memory_space<vmem>>, vector<1x8x1xf32>
      %32 = vector.shape_cast %31 : vector<1x8x1xf32> to vector<8x1xf32>
      %33 = vector.shape_cast %30 : vector<8x1xf32> to vector<1x8x1xf32>
      tpu.vector_store %arg5[%c0_25, %c0_26, %c0_27], %33 {strides = array<i32>} : memref<1x8x1xf32, #tpu.memory_space<vmem>>, vector<1x8x1xf32>,
      %cst_28 = arith.constant 0.000000e+00 : f32
      %34 = vector.broadcast %cst_28 : f32 to vector<8x1xf32>
      %c0_29 = arith.constant 0 : index
      %c0_30 = arith.constant 0 : index
      %c0_31 = arith.constant 0 : index
      %35 = vector.load %arg6[%c0_29, %c0_30, %c0_31] : memref<1x8x1xf32, #tpu.memory_space<vmem>>, vector<1x8x1xf32>
      %36 = vector.shape_cast %35 : vector<1x8x1xf32> to vector<8x1xf32>
      %37 = vector.shape_cast %34 : vector<8x1xf32> to vector<1x8x1xf32>
      tpu.vector_store %arg6[%c0_29, %c0_30, %c0_31], %37 {strides = array<i32>} : memref<1x8x1xf32, #tpu.memory_space<vmem>>, vector<1x8x1xf32>,
      %cst_32 = arith.constant 0.000000e+00 : f32
      %38 = vector.broadcast %cst_32 : f32 to vector<8x1xf32>
      %c0_33 = arith.constant 0 : index
      %c0_34 = arith.constant 0 : index
      %c0_35 = arith.constant 0 : index
      %39 = vector.load %arg7[%c0_33, %c0_34, %c0_35] : memref<1x8x1xf32, #tpu.memory_space<vmem>>, vector<1x8x1xf32>
      %40 = vector.shape_cast %39 : vector<1x8x1xf32> to vector<8x1xf32>
      %41 = vector.shape_cast %38 : vector<8x1xf32> to vector<1x8x1xf32>
      tpu.vector_store %arg7[%c0_33, %c0_34, %c0_35], %41 {strides = array<i32>} : memref<1x8x1xf32, #tpu.memory_space<vmem>>, vector<1x8x1xf32>,
    } else {
    }
    %c0 = arith.constant 0 : index
    %c0_1 = arith.constant 0 : index
    %3 = vector.load %arg3[%c0, %c0_1] : memref<8x256xf32, #tpu.memory_space<vmem>>, vector<8x256xf32>
    %c0_2 = arith.constant 0 : index
    %c0_3 = arith.constant 0 : index
    %4 = vector.load %arg4[%c0_2, %c0_3] : memref<8x256xf32, #tpu.memory_space<vmem>>, vector<8x256xf32>
    %c0_4 = arith.constant 0 : index
    %c0_5 = arith.constant 0 : index
    %c0_6 = arith.constant 0 : index
    %5 = vector.load %arg5[%c0_4, %c0_5, %c0_6] : memref<1x8x1xf32, #tpu.memory_space<vmem>>, vector<1x8x1xf32>
    %6 = vector.shape_cast %5 : vector<1x8x1xf32> to vector<8x1xf32>
    %7 = arith.mulf %3, %4 : vector<8x256xf32>
    %cst = arith.constant dense<0.000000e+00> : vector<8xf32>
    %8 = vector.multi_reduction <add>, %7, %cst [1] : vector<8x256xf32> to vector<8xf32>
    %9 = vector.shape_cast %8 : vector<8xf32> to vector<8x1xf32>
    %10 = arith.addf %6, %9 : vector<8x1xf32>
    %c0_7 = arith.constant 0 : index
    %c0_8 = arith.constant 0 : index
    %c0_9 = arith.constant 0 : index
    %11 = vector.load %arg5[%c0_7, %c0_8, %c0_9] : memref<1x8x1xf32, #tpu.memory_space<vmem>>, vector<1x8x1xf32>
    %12 = vector.shape_cast %11 : vector<1x8x1xf32> to vector<8x1xf32>
    %13 = vector.shape_cast %10 : vector<8x1xf32> to vector<1x8x1xf32>
    tpu.vector_store %arg5[%c0_7, %c0_8, %c0_9], %13 {strides = array<i32>} : memref<1x8x1xf32, #tpu.memory_space<vmem>>, vector<1x8x1xf32>,
    %c0_10 = arith.constant 0 : index
    %c0_11 = arith.constant 0 : index
    %c0_12 = arith.constant 0 : index
    %14 = vector.load %arg6[%c0_10, %c0_11, %c0_12] : memref<1x8x1xf32, #tpu.memory_space<vmem>>, vector<1x8x1xf32>
    %15 = vector.shape_cast %14 : vector<1x8x1xf32> to vector<8x1xf32>
    %cst_13 = arith.constant dense<0.000000e+00> : vector<8xf32>
    %16 = vector.multi_reduction <add>, %3, %cst_13 [1] : vector<8x256xf32> to vector<8xf32>
    %17 = vector.shape_cast %16 : vector<8xf32> to vector<8x1xf32>
    %18 = arith.addf %15, %17 : vector<8x1xf32>
    %c0_14 = arith.constant 0 : index
    %c0_15 = arith.constant 0 : index
    %c0_16 = arith.constant 0 : index
    %19 = vector.load %arg6[%c0_14, %c0_15, %c0_16] : memref<1x8x1xf32, #tpu.memory_space<vmem>>, vector<1x8x1xf32>
    %20 = vector.shape_cast %19 : vector<1x8x1xf32> to vector<8x1xf32>
    %21 = vector.shape_cast %18 : vector<8x1xf32> to vector<1x8x1xf32>
    tpu.vector_store %arg6[%c0_14, %c0_15, %c0_16], %21 {strides = array<i32>} : memref<1x8x1xf32, #tpu.memory_space<vmem>>, vector<1x8x1xf32>,
    %c0_17 = arith.constant 0 : index
    %c0_18 = arith.constant 0 : index
    %c0_19 = arith.constant 0 : index
    %22 = vector.load %arg7[%c0_17, %c0_18, %c0_19] : memref<1x8x1xf32, #tpu.memory_space<vmem>>, vector<1x8x1xf32>
    %23 = vector.shape_cast %22 : vector<1x8x1xf32> to vector<8x1xf32>
    %cst_20 = arith.constant dense<0.000000e+00> : vector<8xf32>
    %24 = vector.multi_reduction <add>, %4, %cst_20 [1] : vector<8x256xf32> to vector<8xf32>
    %25 = vector.shape_cast %24 : vector<8xf32> to vector<8x1xf32>
    %26 = arith.addf %23, %25 : vector<8x1xf32>
    %c0_21 = arith.constant 0 : index
    %c0_22 = arith.constant 0 : index
    %c0_23 = arith.constant 0 : index
    %27 = vector.load %arg7[%c0_21, %c0_22, %c0_23] : memref<1x8x1xf32, #tpu.memory_space<vmem>>, vector<1x8x1xf32>
    %28 = vector.shape_cast %27 : vector<1x8x1xf32> to vector<8x1xf32>
    %29 = vector.shape_cast %26 : vector<8x1xf32> to vector<1x8x1xf32>
    tpu.vector_store %arg7[%c0_21, %c0_22, %c0_23], %29 {strides = array<i32>} : memref<1x8x1xf32, #tpu.memory_space<vmem>>, vector<1x8x1xf32>,
    return
  }
  func.func @transform_0(%arg0: i32, %arg1: i32, %arg2: i32) -> (i32, i32) {
    %c1_i32 = arith.constant 1 : i32
    %0 = arith.muli %arg0, %c1_i32 : i32
    %1 = arith.addi %0, %arg2 : i32
    %c0_i32 = arith.constant 0 : i32
    return %arg1, %1 : i32, i32
  }
  func.func @transform_1(%arg0: i32, %arg1: i32, %arg2: i32) -> (i32, i32) {
    %c1_i32 = arith.constant 1 : i32
    %0 = arith.muli %arg0, %c1_i32 : i32
    %1 = arith.addi %0, %arg2 : i32
    %c0_i32 = arith.constant 0 : i32
    return %arg1, %1 : i32, i32
  }
  func.func @transform_2(%arg0: i32, %arg1: i32, %arg2: i32) -> (i32, i32, i32) {
    %c0_i32 = arith.constant 0 : i32
    %c0_i32_0 = arith.constant 0 : i32
    return %arg0, %arg1, %c0_i32 : i32, i32, i32
  }
  func.func @transform_3(%arg0: i32, %arg1: i32, %arg2: i32) -> (i32, i32, i32) {
    %c0_i32 = arith.constant 0 : i32
    %c0_i32_0 = arith.constant 0 : i32
    return %arg0, %arg1, %c0_i32 : i32, i32, i32
  }
  func.func @transform_4(%arg0: i32, %arg1: i32, %arg2: i32) -> (i32, i32, i32) {
    %c0_i32 = arith.constant 0 : i32
    %c0_i32_0 = arith.constant 0 : i32
    return %arg0, %arg1, %c0_i32 : i32, i32, i32
  }
}

</mosaic_0001>

<bundles_post_ra>
// kernel: tpu_custom_call.1
= control target key start
LH: loop header
LB: loop body
LE: loop exit
PB: predicated region body
PF: predicated region fallthrough
CT: control target
= control target key end

     0   :  { %10 = vsyncpa [#allocation3], 0  ;;  %s223_s0 = inlined_call_operand.hbm [shape: f32[8,256], index: 0, kind: input, shape index: {}]   ;;  %s224_s1 = inlined_call_operand.hbm [shape: f32[8,256], index: 1, kind: input, shape index: {}]   ;;  %s225_s2 = inlined_call_operand.vmem [shape: f32[1,8,1], index: 2, kind: output, shape index: {0}]   ;;  %s226_s3 = inlined_call_operand.vmem [shape: f32[1,8,1], index: 3, kind: output, shape index: {1}]   ;;  %s227_s4 = inlined_call_operand.vmem [shape: f32[1,8,1], index: 4, kind: output, shape index: {2}]  }
   0x1   :  { %s21_s17 = sshll.u32 %s223_s0, 4  ;;  %s22_s17 = int_to_ptr.hbm [resolvable:$true] %s21_s17 }
   0x2   :  { %11 = vsyncpa [#allocation5], 0  ;;  %s156_s18 = smov [#allocation2]   ;;  %s36_s22 = sshll.u32 %s224_s1, 4  ;;  %s37_s22 = int_to_ptr.hbm [resolvable:$true] %s36_s22 }
   0x3   :  { %s23_s19 = sshll.u32 %s156_s18, 4  ;;  %s157_s23 = smov [#allocation4]   ;;  %s24_s19 = int_to_ptr.vmem [resolvable:$true] %s23_s19 }
   0x4   :  { %26 = dma.hbm_to_vmem [thread:$0]  %s22_s17, 256, %s24_s19, [#allocation3]  }
   0x5   :  { %s38_s24 = sshll.u32 %s157_s23, 4  ;;  %s39_s24 = int_to_ptr.vmem [resolvable:$true] %s38_s24 }
   0x6   :  { %41 = dma.hbm_to_vmem [thread:$0]  %s37_s22, 256, %s39_s24, [#allocation5]  }
   0x7   :  { %152 = dma.done.wait [#allocation3], 256  }
   0x8   :  { %153 = vsyncadd [#allocation3], 4294967040 }
   0x9   :  { %154 = dma.done.wait [#allocation5], 256  }
   0xa   :  { %155 = vsyncadd [#allocation5], 4294967040  ;;  %vm58_vm0 = vcmask 7168   ;;  %v158_v0 = vmov 0.0   ;;  %v62_v1 = vld [vmem:[#allocation2] sm:$0xff]  ;;  %v63_v2 = vld [vmem:[#allocation2 + $0x8] sm:$0xff] }
   0xb   :  { %59 = vst.msk [vmem:[%s225_s2] sm:$0xff] %vm58_vm0, %v158_v0  ;;  %v64_v3 = vld [vmem:[#allocation4] sm:$0xff]  ;;  %v65_v4 = vld [vmem:[#allocation4 + $0x8] sm:$0xff]  ;;  %v76_v9 = vadd.f32 %v63_v2, %v62_v1 }
   0xc   :  { %60 = vst.msk [vmem:[%s226_s3] sm:$0xff] %vm58_vm0, %v158_v0  ;;  %v67_v5 = vmul.f32 %v64_v3, %v62_v1  ;;  %v68_v6 = vmul.f32 %v65_v4, %v63_v2  ;;  %v82_v7 = vadd.f32 %v65_v4, %v64_v3 }
   0xd   :  { %61 = vst.msk [vmem:[%s227_s4] sm:$0xff] %vm58_vm0, %v158_v0 }
   0xe   :  { %v69_v8 = vadd.f32 %v68_v6, %v67_v5  ;;  %83 = vadd.xlane.f32.xlu1 %v82_v7 }
  0x10   :  { %70 = vadd.xlane.f32.xlu0 %v69_v8 }
  0x12   :  { %v66_v11 = vld [vmem:[%s225_s2] sm:$0xff] }
  0x13   :  { %v75_v16 = vld [vmem:[%s226_s3] sm:$0xff] }
  0x14   :  { %v81_v10 = vld [vmem:[%s227_s4] sm:$0xff] }
  0x18   :  { %77 = vadd.xlane.f32.xlu0 %v76_v9 }
  0x81   :  { %v84_v12 = vpop.xlane.xlu1 %83 }
  0x82   :  { %v85_v13 = vadd.f32 %v84_v12, %v81_v10 }
  0x83   :  { %v71_v14 = vpop.xlane.xlu0 %70 }
  0x84   :  { %v72_v15 = vadd.f32 %v71_v14, %v66_v11  ;;  %86 = vst.msk [vmem:[%s227_s4] sm:$0xff] %vm58_vm0, %v85_v13 }
  0x86   :  { %74 = vst.msk [vmem:[%s225_s2] sm:$0xff] %vm58_vm0, %v72_v15 }
  0x8b   :  { %v78_v17 = vpop.xlane.xlu0 %77 }
  0x8c   :  { %v79_v18 = vadd.f32 %v78_v17, %v75_v16 }
  0x8e   :  { %80 = vst.msk [vmem:[%s226_s3] sm:$0xff] %vm58_vm0, %v79_v18 }
  0x8f   :  { %99 = vsyncpa [#allocation3], 1 }
  0x90   :  { %100 = vsyncpa [#allocation5], 1 }

</bundles_post_ra>
